<compile_context>
chip_gen: v6e
topology: v6e:2x2x1
jax: 0.10.0
libtpu: 0.0.40
codegen_flags: <defaults>
</compile_context>

<pallas_src>
import functools
import math

import jax
import jax.numpy as jnp
import numpy as np
from jax.experimental import pallas as pl
from jax.experimental.pallas import tpu as pltpu


def _swap01(x):
    """Swap the two leading axes of a rank-3 VMEM array (lane dim untouched)."""
    try:
        return pltpu.einshape("abc->bac", x)
    except Exception:  # fall back to a plain transpose if einshape is unavailable
        return jnp.swapaxes(x, 0, 1)


def _temp_attention_kernel(q_ref, k_ref, v_ref, o_ref, *, scale, mxu_dtype):
    bb = q_ref.shape[0]
    for b in range(bb):                      # static unroll; bb is small by budget
        q = q_ref[b]                         # (L, H, E)
        k = k_ref[b]                         # (S, H, E)
        v = v_ref[b]                         # (S, H, D)

        # Head-major reorder on the VMEM tile (replaces the HBM-level wrapper
        # transposes of the previous version). Scale is folded into the smaller
        # (H,L,E) operand before any down-cast.
        qh = (_swap01(q) * scale).astype(mxu_dtype)    # (H, L, E)
        kh = _swap01(k).astype(mxu_dtype)              # (H, S, E)
        vh = _swap01(v).astype(mxu_dtype)              # (H, S, D)

        # Scores for all heads of this batch row in one batched contraction;
        # the "transposed" rhs is consumed via dimension_numbers (no XLU pass).
        s = jnp.einsum("hle,hse->hls", qh, kh,
                       preferred_element_type=jnp.float32)       # (H, L, S)

        # Numerically stable softmax over the key axis; reciprocal on the EUP.
        m = jnp.max(s, axis=-1, keepdims=True)
        p = jnp.exp(s - m)
        denom = jnp.sum(p, axis=-1, keepdims=True)
        a = p * pl.reciprocal(denom, approx=True)

        ctx = jnp.einsum("hls,hsd->hld", a.astype(mxu_dtype), vh,
                         preferred_element_type=jnp.float32)     # (H, L, D)

        # Store back in the module's native (L, H, D) layout.
        o_ref[b] = _swap01(ctx).astype(o_ref.dtype)


def _vreg_padded(sub, lane):
    """Elements occupied once a (sub, lane) slab is padded to (8, 128) vregs."""
    return ((sub + 7) // 8) * 8 * ((lane + 127) // 128) * 128


def _block_bytes(bb, L, S, H, E, D, itemsize):
    """Conservative, padding-aware VMEM working set of one grid step."""
    # Pipeline I/O in the original (..., H, E/D) layout, double-buffered.
    io = bb * (L * _vreg_padded(H, E) + S * _vreg_padded(H, E)
               + S * _vreg_padded(H, D) + L * _vreg_padded(H, D)) * itemsize * 2
    # In-kernel head-major copies + f32 scores / probs / context.
    interm = bb * H * (_vreg_padded(L, E) + _vreg_padded(S, E)
                       + _vreg_padded(S, D) + 2 * _vreg_padded(L, S)
                       + 2 * _vreg_padded(L, D)) * 4
    return io + interm


def _num_tensorcores():
    """Best-effort TensorCore count (v7x has 2 per chip; v5e/v6e have 1)."""
    try:
        info = pltpu.get_tpu_info()
        for name in ("num_cores", "core_count", "num_tensorcores",
                     "tensorcores_per_chip", "cores_per_chip"):
            val = getattr(info, name, None)
            if isinstance(val, int) and val > 0:
                return val
    except Exception:
        pass
    try:
        if "v7" in jax.devices()[0].device_kind.lower():
            return 2
    except Exception:
        pass
    return 1


def _pick_batch_block(B, L, S, H, E, D, itemsize, num_tc,
                      budget_bytes=16 * 1024 * 1024):
    """Largest divisor of B whose working set fits the VMEM budget.
    Only forces >= num_tc grid steps on multi-TensorCore chips (v7x)."""
    cap = B
    if num_tc > 1 and B >= num_tc:
        cap = max(1, B // num_tc)
    best = 1
    for bb in range(1, cap + 1):
        if B % bb == 0 and _block_bytes(bb, L, S, H, E, D, itemsize) <= budget_bytes:
            best = bb
    return best


def temp_attention1(q, k, v, scale=None, mxu_dtype=None):
    """q:(B,L,H,E) k:(B,S,H,E) v:(B,S,H,D) -> (out:(B,L,H,D), None).

    mxu_dtype: optional dtype for the two MXU contractions (accumulation stays
    f32). Pass jnp.bfloat16 on v6e/v7x for peak MXU throughput; default keeps
    the input dtype (exact for the f32 self-check below).
    """
    B, L, H, E = q.shape
    S = k.shape[1]
    D = v.shape[3]
    scale = float(scale) if scale is not None else 1.0 / math.sqrt(E)
    mxu_dtype = mxu_dtype if mxu_dtype is not None else q.dtype

    num_tc = _num_tensorcores()
    bb = _pick_batch_block(B, L, S, H, E, D, q.dtype.itemsize, num_tc)
    grid = (B // bb,)

    out = pl.pallas_call(
        functools.partial(_temp_attention_kernel, scale=scale, mxu_dtype=mxu_dtype),
        out_shape=jax.ShapeDtypeStruct((B, L, H, D), q.dtype),
        grid_spec=pltpu.PrefetchScalarGridSpec(
            num_scalar_prefetch=0,
            grid=grid,
            in_specs=[
                pl.BlockSpec((bb, L, H, E), lambda i: (i, 0, 0, 0)),
                pl.BlockSpec((bb, S, H, E), lambda i: (i, 0, 0, 0)),
                pl.BlockSpec((bb, S, H, D), lambda i: (i, 0, 0, 0)),
            ],
            out_specs=pl.BlockSpec((bb, L, H, D), lambda i: (i, 0, 0, 0)),
        ),
        compiler_params=pltpu.CompilerParams(
            dimension_semantics=("parallel",),
            vmem_limit_bytes=32 * 1024 * 1024,
        ),
    )(q, k, v)
    return out, None


if __name__ == "__main__":
    # Small shapes consistent with the module: d_model=32, n_heads=4 -> E=D=8.
    B, L, S = 2, 8, 8
    H, E, D = 4, 8, 8

    key = jax.random.PRNGKey(0)
    kq, kk, kv = jax.random.split(key, 3)
    q = jax.random.normal(kq, (B, L, H, E), dtype=jnp.float32)
    k = jax.random.normal(kk, (B, S, H, E), dtype=jnp.float32)
    v = jax.random.normal(kv, (B, S, H, D), dtype=jnp.float32)

    out, attn = temp_attention1(q, k, v)
    out = jax.block_until_ready(out)
    assert attn is None  # module returns (out, None)

    # Pure-JAX reference mirroring the PyTorch forward (dropout in eval mode).
    scores = jnp.einsum("blhe,bshe->bhls", q, k) * (1.0 / math.sqrt(E))
    a_ref = jax.nn.softmax(scores, axis=-1)
    out_ref = jnp.einsum("bhls,bshd->blhd", a_ref, v)

    np.testing.assert_allclose(np.asarray(out), np.asarray(out_ref),
                               rtol=1e-2, atol=1e-2)
    print("KERNEL_OK")
</pallas_src>

<mosaic_0001>
module attributes {stable_mosaic.version = 11 : i64} {
  func.func @_temp_attention_kernel(%arg0: i32, %arg1: memref<2x8x4x8xf32, #tpu.memory_space<vmem>>, %arg2: memref<2x8x4x8xf32, #tpu.memory_space<vmem>>, %arg3: memref<2x8x4x8xf32, #tpu.memory_space<vmem>>, %arg4: memref<2x8x4x8xf32, #tpu.memory_space<vmem>>) attributes {dimension_semantics = [#tpu.dimension_semantics<parallel>], iteration_bounds = array<i64: 1>, scalar_prefetch = 0 : i64, scratch_operands = 0 : i64, tpu.core_type = #tpu.core_type<tc>, window_params = [{transform_indices = @transform_0, window_bounds = array<i64: 2, 8, 4, 8>}, {transform_indices = @transform_1, window_bounds = array<i64: 2, 8, 4, 8>}, {transform_indices = @transform_2, window_bounds = array<i64: 2, 8, 4, 8>}, {transform_indices = @transform_3, window_bounds = array<i64: 2, 8, 4, 8>}]} {
    %c0 = arith.constant 0 : index
    %c0_0 = arith.constant 0 : index
    %c0_1 = arith.constant 0 : index
    %c0_2 = arith.constant 0 : index
    %0 = vector.load %arg1[%c0, %c0_0, %c0_1, %c0_2] : memref<2x8x4x8xf32, #tpu.memory_space<vmem>>, vector<1x8x4x8xf32>
    %1 = vector.shape_cast %0 : vector<1x8x4x8xf32> to vector<8x4x8xf32>
    %c0_3 = arith.constant 0 : index
    %c0_4 = arith.constant 0 : index
    %c0_5 = arith.constant 0 : index
    %c0_6 = arith.constant 0 : index
    %2 = vector.load %arg2[%c0_3, %c0_4, %c0_5, %c0_6] : memref<2x8x4x8xf32, #tpu.memory_space<vmem>>, vector<1x8x4x8xf32>
    %3 = vector.shape_cast %2 : vector<1x8x4x8xf32> to vector<8x4x8xf32>
    %c0_7 = arith.constant 0 : index
    %c0_8 = arith.constant 0 : index
    %c0_9 = arith.constant 0 : index
    %c0_10 = arith.constant 0 : index
    %4 = vector.load %arg3[%c0_7, %c0_8, %c0_9, %c0_10] : memref<2x8x4x8xf32, #tpu.memory_space<vmem>>, vector<1x8x4x8xf32>
    %5 = vector.shape_cast %4 : vector<1x8x4x8xf32> to vector<8x4x8xf32>
    %6 = tpu.transpose %1, [1, 0, 2] : vector<8x4x8xf32> -> vector<4x8x8xf32>
    %cst = arith.constant 0.353553385 : f32
    %7 = vector.broadcast %cst : f32 to vector<4x8x8xf32>
    %8 = arith.mulf %6, %7 : vector<4x8x8xf32>
    %9 = tpu.transpose %3, [1, 0, 2] : vector<8x4x8xf32> -> vector<4x8x8xf32>
    %10 = tpu.transpose %5, [1, 0, 2] : vector<8x4x8xf32> -> vector<4x8x8xf32>
    "tpu.trace_start"() <{level = 10 : i32, message = "hle,hse->hls"}> : () -> ()
    %cst_11 = arith.constant dense<0.000000e+00> : vector<4x8x8xf32>
    %11 = tpu.matmul %8, %9, %cst_11 {dimension_numbers = #tpu.dot_dimension_numbers<[2], [2], [1], [1], [0, 0, 0, 1, 1, 1], [0], [0]>} : vector<4x8x8xf32>, vector<4x8x8xf32>, vector<4x8x8xf32> -> vector<4x8x8xf32>
    "tpu.trace_stop"() : () -> ()
    %cst_12 = arith.constant dense<0xFF800000> : vector<4x8xf32>
    %12 = vector.multi_reduction <maximumf>, %11, %cst_12 [2] : vector<4x8x8xf32> to vector<4x8xf32>
    %13 = vector.shape_cast %12 : vector<4x8xf32> to vector<4x8x1xf32>
    %14 = vector.broadcast %13 : vector<4x8x1xf32> to vector<4x8x8xf32>
    %15 = arith.subf %11, %14 : vector<4x8x8xf32>
    %16 = math.exp %15 : vector<4x8x8xf32>
    %cst_13 = arith.constant dense<0.000000e+00> : vector<4x8xf32>
    %17 = vector.multi_reduction <add>, %16, %cst_13 [2] : vector<4x8x8xf32> to vector<4x8xf32>
    %18 = vector.shape_cast %17 : vector<4x8xf32> to vector<4x8x1xf32>
    %19 = tpu.reciprocal %18 {approx = true} : vector<4x8x1xf32> -> vector<4x8x1xf32>
    %20 = vector.broadcast %19 : vector<4x8x1xf32> to vector<4x8x8xf32>
    %21 = arith.mulf %16, %20 : vector<4x8x8xf32>
    "tpu.trace_start"() <{level = 10 : i32, message = "hls,hsd->hld"}> : () -> ()
    %cst_14 = arith.constant dense<0.000000e+00> : vector<4x8x8xf32>
    %22 = tpu.matmul %21, %10, %cst_14 {dimension_numbers = #tpu.dot_dimension_numbers<[2], [1], [1], [2], [0, 0, 0, 1, 1, 2], [0], [0]>} : vector<4x8x8xf32>, vector<4x8x8xf32>, vector<4x8x8xf32> -> vector<4x8x8xf32>
    "tpu.trace_stop"() : () -> ()
    %23 = tpu.transpose %22, [1, 0, 2] : vector<4x8x8xf32> -> vector<8x4x8xf32>
    %c0_15 = arith.constant 0 : index
    %c0_16 = arith.constant 0 : index
    %c0_17 = arith.constant 0 : index
    %c0_18 = arith.constant 0 : index
    %24 = vector.load %arg4[%c0_15, %c0_16, %c0_17, %c0_18] : memref<2x8x4x8xf32, #tpu.memory_space<vmem>>, vector<1x8x4x8xf32>
    %25 = vector.shape_cast %24 : vector<1x8x4x8xf32> to vector<8x4x8xf32>
    %26 = vector.shape_cast %23 : vector<8x4x8xf32> to vector<1x8x4x8xf32>
    tpu.vector_store %arg4[%c0_15, %c0_16, %c0_17, %c0_18], %26 {strides = array<i32>} : memref<2x8x4x8xf32, #tpu.memory_space<vmem>>, vector<1x8x4x8xf32>,
    %c1 = arith.constant 1 : index
    %c0_19 = arith.constant 0 : index
    %c0_20 = arith.constant 0 : index
    %c0_21 = arith.constant 0 : index
    %27 = vector.load %arg1[%c1, %c0_19, %c0_20, %c0_21] : memref<2x8x4x8xf32, #tpu.memory_space<vmem>>, vector<1x8x4x8xf32>
    %28 = vector.shape_cast %27 : vector<1x8x4x8xf32> to vector<8x4x8xf32>
    %c1_22 = arith.constant 1 : index
    %c0_23 = arith.constant 0 : index
    %c0_24 = arith.constant 0 : index
    %c0_25 = arith.constant 0 : index
    %29 = vector.load %arg2[%c1_22, %c0_23, %c0_24, %c0_25] : memref<2x8x4x8xf32, #tpu.memory_space<vmem>>, vector<1x8x4x8xf32>
    %30 = vector.shape_cast %29 : vector<1x8x4x8xf32> to vector<8x4x8xf32>
    %c1_26 = arith.constant 1 : index
    %c0_27 = arith.constant 0 : index
    %c0_28 = arith.constant 0 : index
    %c0_29 = arith.constant 0 : index
    %31 = vector.load %arg3[%c1_26, %c0_27, %c0_28, %c0_29] : memref<2x8x4x8xf32, #tpu.memory_space<vmem>>, vector<1x8x4x8xf32>
    %32 = vector.shape_cast %31 : vector<1x8x4x8xf32> to vector<8x4x8xf32>
    %33 = tpu.transpose %28, [1, 0, 2] : vector<8x4x8xf32> -> vector<4x8x8xf32>
    %cst_30 = arith.constant 0.353553385 : f32
    %34 = vector.broadcast %cst_30 : f32 to vector<4x8x8xf32>
    %35 = arith.mulf %33, %34 : vector<4x8x8xf32>
    %36 = tpu.transpose %30, [1, 0, 2] : vector<8x4x8xf32> -> vector<4x8x8xf32>
    %37 = tpu.transpose %32, [1, 0, 2] : vector<8x4x8xf32> -> vector<4x8x8xf32>
    "tpu.trace_start"() <{level = 10 : i32, message = "hle,hse->hls"}> : () -> ()
    %cst_31 = arith.constant dense<0.000000e+00> : vector<4x8x8xf32>
    %38 = tpu.matmul %35, %36, %cst_31 {dimension_numbers = #tpu.dot_dimension_numbers<[2], [2], [1], [1], [0, 0, 0, 1, 1, 1], [0], [0]>} : vector<4x8x8xf32>, vector<4x8x8xf32>, vector<4x8x8xf32> -> vector<4x8x8xf32>
    "tpu.trace_stop"() : () -> ()
    %cst_32 = arith.constant dense<0xFF800000> : vector<4x8xf32>
    %39 = vector.multi_reduction <maximumf>, %38, %cst_32 [2] : vector<4x8x8xf32> to vector<4x8xf32>
    %40 = vector.shape_cast %39 : vector<4x8xf32> to vector<4x8x1xf32>
    %41 = vector.broadcast %40 : vector<4x8x1xf32> to vector<4x8x8xf32>
    %42 = arith.subf %38, %41 : vector<4x8x8xf32>
    %43 = math.exp %42 : vector<4x8x8xf32>
    %cst_33 = arith.constant dense<0.000000e+00> : vector<4x8xf32>
    %44 = vector.multi_reduction <add>, %43, %cst_33 [2] : vector<4x8x8xf32> to vector<4x8xf32>
    %45 = vector.shape_cast %44 : vector<4x8xf32> to vector<4x8x1xf32>
    %46 = tpu.reciprocal %45 {approx = true} : vector<4x8x1xf32> -> vector<4x8x1xf32>
    %47 = vector.broadcast %46 : vector<4x8x1xf32> to vector<4x8x8xf32>
    %48 = arith.mulf %43, %47 : vector<4x8x8xf32>
    "tpu.trace_start"() <{level = 10 : i32, message = "hls,hsd->hld"}> : () -> ()
    %cst_34 = arith.constant dense<0.000000e+00> : vector<4x8x8xf32>
    %49 = tpu.matmul %48, %37, %cst_34 {dimension_numbers = #tpu.dot_dimension_numbers<[2], [1], [1], [2], [0, 0, 0, 1, 1, 2], [0], [0]>} : vector<4x8x8xf32>, vector<4x8x8xf32>, vector<4x8x8xf32> -> vector<4x8x8xf32>
    "tpu.trace_stop"() : () -> ()
    %50 = tpu.transpose %49, [1, 0, 2] : vector<4x8x8xf32> -> vector<8x4x8xf32>
    %c1_35 = arith.constant 1 : index
    %c0_36 = arith.constant 0 : index
    %c0_37 = arith.constant 0 : index
    %c0_38 = arith.constant 0 : index
    %51 = vector.load %arg4[%c1_35, %c0_36, %c0_37, %c0_38] : memref<2x8x4x8xf32, #tpu.memory_space<vmem>>, vector<1x8x4x8xf32>
    %52 = vector.shape_cast %51 : vector<1x8x4x8xf32> to vector<8x4x8xf32>
    %53 = vector.shape_cast %50 : vector<8x4x8xf32> to vector<1x8x4x8xf32>
    tpu.vector_store %arg4[%c1_35, %c0_36, %c0_37, %c0_38], %53 {strides = array<i32>} : memref<2x8x4x8xf32, #tpu.memory_space<vmem>>, vector<1x8x4x8xf32>,
    return
  }
  func.func @transform_0(%arg0: i32) -> (i32, i32, i32, i32) {
    %c0_i32 = arith.constant 0 : i32
    %c0_i32_0 = arith.constant 0 : i32
    %c0_i32_1 = arith.constant 0 : i32
    %c0_i32_2 = arith.constant 0 : i32
    return %arg0, %c0_i32, %c0_i32_0, %c0_i32_1 : i32, i32, i32, i32
  }
  func.func @transform_1(%arg0: i32) -> (i32, i32, i32, i32) {
    %c0_i32 = arith.constant 0 : i32
    %c0_i32_0 = arith.constant 0 : i32
    %c0_i32_1 = arith.constant 0 : i32
    %c0_i32_2 = arith.constant 0 : i32
    return %arg0, %c0_i32, %c0_i32_0, %c0_i32_1 : i32, i32, i32, i32
  }
  func.func @transform_2(%arg0: i32) -> (i32, i32, i32, i32) {
    %c0_i32 = arith.constant 0 : i32
    %c0_i32_0 = arith.constant 0 : i32
    %c0_i32_1 = arith.constant 0 : i32
    %c0_i32_2 = arith.constant 0 : i32
    return %arg0, %c0_i32, %c0_i32_0, %c0_i32_1 : i32, i32, i32, i32
  }
  func.func @transform_3(%arg0: i32) -> (i32, i32, i32, i32) {
    %c0_i32 = arith.constant 0 : i32
    %c0_i32_0 = arith.constant 0 : i32
    %c0_i32_1 = arith.constant 0 : i32
    %c0_i32_2 = arith.constant 0 : i32
    return %arg0, %c0_i32, %c0_i32_0, %c0_i32_1 : i32, i32, i32, i32
  }
}

</mosaic_0001>

<bundles_post_ra>
// kernel: tpu_custom_call.1
= control target key start
LH: loop header
LB: loop body
LE: loop exit
PB: predicated region body
PF: predicated region fallthrough
CT: control target
= control target key end

     0   :  { %8 = vsyncpa [#allocation3], 0  ;;  %s2522_s0 = inlined_call_operand.hbm [shape: f32[2,8,4,8], index: 0, kind: input, shape index: {}]   ;;  %s2523_s1 = inlined_call_operand.hbm [shape: f32[2,8,4,8], index: 1, kind: input, shape index: {}]   ;;  %s2524_s2 = inlined_call_operand.hbm [shape: f32[2,8,4,8], index: 2, kind: input, shape index: {}]   ;;  %s2525_s3 = inlined_call_operand.hbm [shape: f32[2,8,4,8], index: 3, kind: output, shape index: {}]  }
   0x1   :  { %9 = vsyncpa [#allocation6], 0 }
   0x2   :  { %10 = vsyncpa [#allocation4], 0  ;;  %s2264_s12 = smov [#allocation5]   ;;  %s2265_s14 = smov [#allocation2]  }
   0x3   :  { %s28_s13 = sshll.u32 %s2264_s12, 4  ;;  %s16_s15 = sshll.u32 %s2265_s14, 4  ;;  %s29_s13 = int_to_ptr.vmem [resolvable:$true] %s28_s13  ;;  %s17_s15 = int_to_ptr.vmem [resolvable:$true] %s16_s15 }
   0x4   :  { %s2186_s16 = scalar_lea.vmem %s29_s13, 1024  ;;  %p2191_p1 = scmp.lt.s32.totalorder %s29_s13, %s29_s13 }
   0x5   :  { %p2187_p0 = scmp.ne.s32.totalorder %s29_s13, %s2186_s16  ;;  %p2192_p2 = scmp.lt.s32.totalorder %s2186_s16, %s2186_s16 }
   0x7   :  { %p2193_p3 = por %p2192_p2, %p2191_p1 }
   0x9   :  { %p2194_p4 = pnand %p2193_p3, %p2187_p0 }
   0xb   :  { %2197 = shalt.err (!%p2194_p4)
}
   0xc   :  { %s2266_s17 = smov 64   ;;  %s2267_s18 = smov 4  }
   0xd   :  { %34 = dma.hbm_to_vmem [thread:$0]  %s2523_s1, 1024, %s29_s13, [#allocation6], %s2266_s17, %s2266_s17, %s2267_s18  }
   0xe   :  { %s2206_s21 = scalar_lea.vmem %s17_s15, 1024  ;;  %p2211_p6 = scmp.lt.s32.totalorder %s17_s15, %s17_s15 }
   0xf   :  { %p2207_p5 = scmp.ne.s32.totalorder %s17_s15, %s2206_s21  ;;  %p2212_p7 = scmp.lt.s32.totalorder %s2206_s21, %s2206_s21 }
  0x11   :  { %p2213_p8 = por %p2212_p7, %p2211_p6 }
  0x13   :  { %p2214_p9 = pnand %p2213_p8, %p2207_p5 }
  0x15   :  { %2217 = shalt.err (!%p2214_p9)
}
  0x16   :  { %22 = dma.hbm_to_vmem [thread:$0]  %s2522_s0, 1024, %s17_s15, [#allocation3], %s2266_s17, %s2266_s17, %s2267_s18  }
  0x17   :  { %s2268_s24 = smov [#allocation7]  }
  0x18   :  { %s40_s25 = sshll.u32 %s2268_s24, 4  ;;  %s41_s25 = int_to_ptr.vmem [resolvable:$true] %s40_s25 }
  0x19   :  { %s2226_s26 = scalar_lea.vmem %s41_s25, 1024  ;;  %p2231_p11 = scmp.lt.s32.totalorder %s41_s25, %s41_s25 }
  0x1a   :  { %p2227_p10 = scmp.ne.s32.totalorder %s41_s25, %s2226_s26  ;;  %p2232_p12 = scmp.lt.s32.totalorder %s2226_s26, %s2226_s26 }
  0x1c   :  { %p2233_p13 = por %p2232_p12, %p2231_p11 }
  0x1e   :  { %p2234_p0 = pnand %p2233_p13, %p2227_p10 }
  0x20   :  { %2237 = shalt.err (!%p2234_p0)
}
  0x21   :  { %46 = dma.hbm_to_vmem [thread:$0]  %s2524_s2, 1024, %s41_s25, [#allocation6], %s2266_s17, %s2266_s17, %s2267_s18  }
  0x22   :  { %2258 = dma.done.wait [#allocation3], 1024  }
  0x23   :  { %2259 = vsyncadd [#allocation3], 4294966272 }
  0x24   :  { %2260 = dma.done.wait [#allocation6], 2048  }
  0x25   :  { %2261 = vsyncadd [#allocation6], 4294965248  ;;  %v84_v0 = vlaneseq  ;;  %v2269_v1 = vmov 0.0   ;;  %v2270_v2 = vmov 1983009808   ;;  %vm2271_vm0 = vmmov 0  }
  0x26   :  { %2032 = vmatprep.subr.mxu0 %v2269_v1  ;;  %v82_v3 = vunpack.c.l.s4 %v2270_v2  ;;  %2037 = vmatprep.subr.mxu1 %v2269_v1  ;;  %v2272_v6 = vmov 1934713408   ;;  %v2122_v10 = vld [vmem:[#allocation5] ss:$8 sps:$4 sm:$0xff]   ;;  %vm288_vm1 = vcmask 64512   ;;  %vm997_vm2 = vcmask 60416  }
  0x27   :  { %2034 = vmatprep.mubr.msk.f32.mxu0 %vm2271_vm0, %v2269_v1  ;;  %2039 = vmatprep.mubr.msk.f32.mxu1 %vm2271_vm0, %v2269_v1  ;;  %v85_v5 = vshrl.u32 %v84_v0, 7  ;;  %v115_v7 = vunpack.c.l.s4 %v2272_v6  ;;  %v2123_v11 = vld [vmem:[#allocation5 + $0x4] ss:$8 sps:$4 sm:$0xff]   ;;  %v2124_v12 = vld [vmem:[#allocation5 + $0x10] ss:$8 sps:$4 sm:$0xff]   ;;  %s2273_s0 = smov [#allocation8]  }
  0x28   :  { %v83_v4 = vunpack.c.0.s8 %v82_v3  ;;  %v2125_v13 = vld [vmem:[#allocation5 + $0x14] ss:$8 sps:$4 sm:$0xff]   ;;  %v2126_v19 = vld [vmem:[#allocation2] ss:$8 sps:$4 sm:$0xff]   ;;  %v2127_v22 = vld [vmem:[#allocation2 + $0x4] ss:$8 sps:$4 sm:$0xff]  }
  0x29   :  { %v116_v9 = vunpack.c.0.s8 %v115_v7  ;;  %v2128_v23 = vld [vmem:[#allocation2 + $0x10] ss:$8 sps:$4 sm:$0xff]   ;;  %v2129_v24 = vld [vmem:[#allocation2 + $0x14] ss:$8 sps:$4 sm:$0xff]   ;;  %s1963_s2 = sshll.u32 %s2273_s0, 4  ;;  %s1964_s2 = int_to_ptr.vmem [resolvable:$true] %s1963_s2 }
  0x2a   :  { %v2318_v8 = vsub.s32 %v83_v4, %v85_v5  ;;  %s2238_s28 = scalar_lea.vmem %s1964_s2, 1024  ;;  %p2243_p2 = scmp.lt.s32.totalorder %s1964_s2, %s1964_s2 }
  0x2b   :  { %v2321_v15 = vsub.s32 %v116_v9, %v85_v5  ;;  %p2239_p1 = scmp.ne.s32.totalorder %s1964_s2, %s2238_s28  ;;  %p2244_p3 = scmp.lt.s32.totalorder %s2238_s28, %s2238_s28 }
  0x2c   :  { %v159_v14 = vrot.slane %v2122_v10, %v2318_v8  ;;  %v167_v16 = vrot.slane %v2123_v11, %v2318_v8  ;;  %v175_v17 = vrot.slane %v2124_v12, %v2318_v8  ;;  %v183_v18 = vrot.slane %v2125_v13, %v2318_v8 }
  0x2d   :  { %v87_v27 = vrot.slane %v2126_v19, %v2318_v8  ;;  %v95_v30 = vrot.slane %v2127_v22, %v2318_v8  ;;  %v103_v31 = vrot.slane %v2128_v23, %v2318_v8  ;;  %v111_v32 = vrot.slane %v2129_v24, %v2318_v8  ;;  %p2245_p4 = por %p2244_p3, %p2243_p2 }
  0x2e   :  { %v184_v20 = vcombine.low %v159_v14, %v167_v16  ;;  %v200_v21 = vcombine.low %v175_v17, %v183_v18  ;;  %v185_v25 = vcombine.high %v159_v14, %v167_v16  ;;  %v201_v26 = vcombine.high %v175_v17, %v183_v18 }
  0x2f   :  { %v112_v34 = vcombine.low %v87_v27, %v95_v30  ;;  %v113_v35 = vcombine.high %v87_v27, %v95_v30  ;;  %v128_v37 = vcombine.low %v103_v31, %v111_v32  ;;  %v129_v38 = vcombine.high %v103_v31, %v111_v32  ;;  %v2131_v27 = vld [vmem:[#allocation7 + $0x4] ss:$8 sps:$4 sm:$0xff]   ;;  %p2246_p5 = pnand %p2245_p4, %p2239_p1 }
  0x30   :  { %v192_v28 = vrot.slane %v184_v20, %v2321_v15  ;;  %v208_v29 = vrot.slane %v200_v21, %v2321_v15  ;;  %v199_v39 = vrot.slane %v185_v25, %v2321_v15  ;;  %v215_v41 = vrot.slane %v201_v26, %v2321_v15  ;;  %v2130_v26 = vld [vmem:[#allocation7] ss:$8 sps:$4 sm:$0xff]  }
  0x31   :  { %v120_v40 = vrot.slane %v112_v34, %v2321_v15  ;;  %v127_v42 = vrot.slane %v113_v35, %v2321_v15  ;;  %v136_v43 = vrot.slane %v128_v37, %v2321_v15  ;;  %v143_v44 = vrot.slane %v129_v38, %v2321_v15 }
  0x32   :  { %v216_v33 = vcombine.low %v192_v28, %v208_v29  ;;  %v217_v36 = vcombine.high %v192_v28, %v208_v29  ;;  %v218_v48 = vcombine.low %v199_v39, %v215_v41  ;;  %v219_v52 = vcombine.high %v199_v39, %v215_v41  ;;  %v2132_v28 = vld [vmem:[#allocation7 + $0x10] ss:$8 sps:$4 sm:$0xff]   ;;  %v2133_v29 = vld [vmem:[#allocation7 + $0x14] ss:$8 sps:$4 sm:$0xff]  }
  0x33   :  { %v144_v45 = vcombine.low %v120_v40, %v136_v43  ;;  %v145_v46 = vcombine.high %v120_v40, %v136_v43  ;;  %v146_v47 = vcombine.low %v127_v42, %v143_v44  ;;  %v147_v49 = vcombine.high %v127_v42, %v143_v44 }
  0x34   :  { %2033 = vmatpush3.xpose.msk.msra.mxu0 %vm288_vm1, %v216_v33  ;;  %2038 = vmatpush3.xpose.msk.msra.mxu1 %vm288_vm1, %v217_v36  ;;  %v227_v30 = vrot.slane %v2130_v26, %v2318_v8  ;;  %v235_v31 = vrot.slane %v2131_v27, %v2318_v8  ;;  %v243_v32 = vrot.slane %v2132_v28, %v2318_v8 }
  0x35   :  { %2042 = vmatprep.subr.mxu0 %v2269_v1  ;;  %2047 = vmatprep.subr.mxu1 %v2269_v1  ;;  %v148_v50 = vmul.f32 0.35355338, %v144_v45  ;;  %v149_v51 = vmul.f32 0.35355338, %v145_v46  ;;  %v150_v53 = vmul.f32 0.35355338, %v146_v47  ;;  %v251_v33 = vrot.slane %v2133_v29, %v2318_v8 }
  0x36   :  { %v151_v54 = vmul.f32 0.35355338, %v147_v49  ;;  %v252_v34 = vcombine.low %v227_v30, %v235_v31  ;;  %v253_v38 = vcombine.high %v227_v30, %v235_v31  ;;  %v2134_v47 = vld [vmem:[#allocation5 + $0x20] ss:$8 sps:$4 sm:$0xff]  }
  0x37   :  { %2035 = vmatmul.mubr.msk.f32.vlgmr.msra.gmra.mxu0 %vm288_vm1, %v148_v50  ;;  %2040 = vmatmul.mubr.msk.f32.vlgmr.msra.gmra.mxu1 %vm288_vm1, %v149_v51  ;;  %v268_v35 = vcombine.low %v243_v32, %v251_v33  ;;  %v269_v39 = vcombine.high %v243_v32, %v251_v33  ;;  %v2138_v49 = vld [vmem:[#allocation2 + $0x20] ss:$8 sps:$4 sm:$0xff]   ;;  %v2139_v50 = vld [vmem:[#allocation2 + $0x24] ss:$8 sps:$4 sm:$0xff]   ;;  %v2140_v51 = vld [vmem:[#allocation2 + $0x30] ss:$8 sps:$4 sm:$0xff]  }
  0x38   :  { %2043 = vmatpush3.xpose.msk.msra.mxu0 %vm288_vm1, %v218_v48  ;;  %2044 = vmatprep.mubr.msk.f32.mxu0 %vm2271_vm0, %v2269_v1  ;;  %v260_v36 = vrot.slane %v252_v34, %v2321_v15  ;;  %v2385_v42 = vrot.slane %v253_v38, %v2321_v15  ;;  %v2135_v48 = vld [vmem:[#allocation5 + $0x24] ss:$8 sps:$4 sm:$0xff]  }
  0x39   :  { %2048 = vmatpush3.xpose.msk.msra.mxu1 %vm288_vm1, %v219_v52  ;;  %2049 = vmatprep.mubr.msk.f32.mxu1 %vm2271_vm0, %v2269_v1  ;;  %v276_v37 = vrot.slane %v268_v35, %v2321_v15  ;;  %v2388_v43 = vrot.slane %v269_v39, %v2321_v15  ;;  %v2141_v52 = vld [vmem:[#allocation2 + $0x34] ss:$8 sps:$4 sm:$0xff]  }
  0x3a   :  { %2052 = vmatprep.subr.mxu0 %v2269_v1  ;;  %2057 = vmatprep.subr.mxu1 %v2269_v1 }
  0x3b   :  { %2045 = vmatmul.mubr.msk.f32.vlgmr.msra.gmra.mxu0 %vm288_vm1, %v150_v53  ;;  %v284_v40 = vcombine.low %v260_v36, %v276_v37  ;;  %v285_v41 = vcombine.high %v260_v36, %v276_v37  ;;  %v286_v44 = vcombine.low %v2385_v42, %v2388_v43  ;;  %v287_v45 = vcombine.high %v2385_v42, %v2388_v43  ;;  %v2136_v53 = vld [vmem:[#allocation5 + $0x30] ss:$8 sps:$4 sm:$0xff]  }
  0x3c   :  { %2050 = vmatmul.mubr.msk.f32.vlgmr.msra.gmra.mxu1 %vm288_vm1, %v151_v54  ;;  %2054 = vmatprep.mubr.msk.f32.mxu0 %vm2271_vm0, %v2269_v1  ;;  %v2137_v54 = vld [vmem:[#allocation5 + $0x34] ss:$8 sps:$4 sm:$0xff]  }
  0x3d   :  { %2059 = vmatprep.mubr.msk.f32.mxu1 %vm2271_vm0, %v2269_v1  ;;  %2053 = vmatpush3.msra.mxu0 %v284_v40 }
  0x3e   :  { %2058 = vmatpush3.msra.mxu1 %v285_v41  ;;  %2062 = vmatprep.subr.mxu0 %v2269_v1 }
  0x3f   :  { %2067 = vmatprep.subr.mxu1 %v2269_v1 }
  0xf7   :  { %v361_v55 = vpop.f32.mrf.mxu0  ;;  %v437_v56 = vpop.f32.mrf.mxu1 }
  0xf8   :  { %v593_v57 = vsel %vm288_vm1, %v361_v55, -inf  ;;  %v596_v60 = vsel %vm288_vm1, %v437_v56, -inf }
  0xf9   :  { %594 = vmax.xlane.f32.xlu0 %v593_v57  ;;  %v2036_v58 = vpop.f32.mrf.mxu0  ;;  %v2041_v59 = vpop.f32.mrf.mxu1  ;;  %v1112_v57 = vrot.slane %v2134_v47, %v2318_v8 }
  0xfa   :  { %v1120_v58 = vrot.slane %v2135_v48, %v2318_v8  ;;  %v1040_v59 = vrot.slane %v2138_v49, %v2318_v8 }
  0xfb   :  { %v513_v61 = vpop.f32.mrf.mxu0 }
  0xfc   :  { %v599_v62 = vsel %vm288_vm1, %v513_v61, -inf  ;;  %v589_v63 = vpop.f32.mrf.mxu1 }
  0xfd   :  { %597 = vmax.xlane.f32.xlu0 %v596_v60  ;;  %600 = vmax.xlane.f32.xlu1 %v599_v62  ;;  %v2046_v0 = vpop.f32.mrf.mxu0  ;;  %v602_v3 = vsel %vm288_vm1, %v589_v63, -inf  ;;  %v1048_v60 = vrot.slane %v2139_v50, %v2318_v8  ;;  %v1064_v62 = vrot.slane %v2141_v52, %v2318_v8 }
  0xfe   :  { %v2051_v2 = vpop.f32.mrf.mxu1  ;;  %v1136_v0 = vrot.slane %v2137_v54, %v2318_v8 }
 0x101   :  { %603 = vmax.xlane.f32.xlu1 %v602_v3  ;;  %v1137_v3 = vcombine.low %v1112_v57, %v1120_v58 }
 0x182   :  { %v595_v4 = vpop.xlane.xlu0 %594 }
 0x183   :  { %v605_v5 = vsub.f32 %v361_v55, %v595_v4  ;;  %v1065_v4 = vcombine.low %v1040_v59, %v1048_v60 }
 0x185   :  { %v609_v6 = vmul.f32 1.442695, %v605_v5 }
 0x186   :  { %v598_v7 = vpop.xlane.xlu0 %597  ;;  %v601_v9 = vpop.xlane.xlu1 %600 }
 0x187   :  { %2146 = vpow2.f32 %v609_v6  ;;  %v606_v10 = vsub.f32 %v437_v56, %v598_v7  ;;  %v607_v11 = vsub.f32 %v513_v61, %v601_v9  ;;  %v1056_v61 = vrot.slane %v2140_v51, %v2318_v8 }
 0x188   :  { %v1145_v7 = vrot.slane %v1137_v3, %v2321_v15 }
 0x189   :  { %v611_v12 = vmul.f32 1.442695, %v606_v10  ;;  %v613_v13 = vmul.f32 1.442695, %v607_v11  ;;  %v1081_v5 = vcombine.low %v1056_v61, %v1064_v62  ;;  %v1073_v10 = vrot.slane %v1065_v4, %v2321_v15 }
 0x18a   :  { %v604_v14 = vpop.xlane.xlu1 %603 }
 0x18b   :  { %2148 = vpow2.f32 %v611_v12  ;;  %v608_v16 = vsub.f32 %v589_v63, %v604_v14  ;;  %v1128_v63 = vrot.slane %v2136_v53, %v2318_v8  ;;  %v1089_v11 = vrot.slane %v1081_v5, %v2321_v15 }
 0x18c   :  { %2150 = vpow2.f32 %v613_v13  ;;  %v1066_v12 = vcombine.high %v1040_v59, %v1048_v60  ;;  %v1082_v13 = vcombine.high %v1056_v61, %v1064_v62 }
 0x18d   :  { %v615_v17 = vmul.f32 1.442695, %v608_v16  ;;  %v1153_v6 = vcombine.low %v1128_v63, %v1136_v0  ;;  %v1098_v32 = vcombine.high %v1073_v10, %v1089_v11 }
 0x18e   :  { %v1096_v26 = vrot.slane %v1082_v13, %v2321_v15 }
 0x18f   :  { %2152 = vpow2.f32 %v615_v17  ;;  %v1161_v16 = vrot.slane %v1153_v6, %v2321_v15  ;;  %v1138_v17 = vcombine.high %v1112_v57, %v1120_v58 }
 0x191   :  { %v1152_v29 = vrot.slane %v1138_v17, %v2321_v15  ;;  %v1170_v35 = vcombine.high %v1145_v7, %v1161_v16 }
 0x194   :  { %v2362_v18 = vpop.eup %2146 }
 0x195   :  { %v617_v19 = vsel %vm288_vm1, %v2362_v18, 0.0 }
 0x196   :  { %618 = vadd.xlane.f32.xlu0 %v617_v19  ;;  %v1154_v19 = vcombine.high %v1128_v63, %v1136_v0 }
 0x198   :  { %v2366_v20 = vpop.eup %2148  ;;  %v1168_v30 = vrot.slane %v1154_v19, %v2321_v15 }
 0x199   :  { %v2368_v21 = vpop.eup %2150  ;;  %v620_v22 = vsel %vm288_vm1, %v2366_v20, 0.0 }
 0x19a   :  { %621 = vadd.xlane.f32.xlu1 %v620_v22  ;;  %v623_v23 = vsel %vm288_vm1, %v2368_v21, 0.0  ;;  %v1171_v37 = vcombine.low %v1152_v29, %v1168_v30  ;;  %v1172_v40 = vcombine.high %v1152_v29, %v1168_v30 }
 0x19b   :  { %624 = vadd.xlane.f32.xlu0 %v623_v23  ;;  %v1097_v23 = vcombine.low %v1073_v10, %v1089_v11 }
 0x19c   :  { %v2374_v24 = vpop.eup %2152 }
 0x19d   :  { %v626_v25 = vsel %vm288_vm1, %v2374_v24, 0.0  ;;  %v1101_v34 = vmul.f32 0.35355338, %v1097_v23 }
 0x19e   :  { %627 = vadd.xlane.f32.xlu1 %v626_v25  ;;  %v1080_v25 = vrot.slane %v1066_v12, %v2321_v15 }
 0x1a0   :  { %v1099_v36 = vcombine.low %v1080_v25, %v1096_v26  ;;  %v1100_v38 = vcombine.high %v1080_v25, %v1096_v26 }
 0x1a2   :  { %v1103_v39 = vmul.f32 0.35355338, %v1099_v36 }
 0x21f   :  { %v619_v46 = vpop.xlane.xlu0 %618 }
 0x220   :  { %2154 = vrcp.f32 %v619_v46 }
 0x223   :  { %v622_v55 = vpop.xlane.xlu1 %621 }
 0x224   :  { %v625_v56 = vpop.xlane.xlu0 %624  ;;  %2156 = vrcp.f32 %v622_v55 }
 0x225   :  { %2158 = vrcp.f32 %v625_v56 }
 0x227   :  { %v628_v2 = vpop.xlane.xlu1 %627 }
 0x228   :  { %2160 = vrcp.f32 %v628_v2 }
 0x22d   :  { %v2155_v9 = vpop.eup %2154 }
 0x22e   :  { %v633_v14 = vmul.f32 %v2155_v9, %v2362_v18  ;;  %v1169_v18 = vcombine.low %v1145_v7, %v1161_v16 }
 0x230   :  { %2055 = vmatmul.mubr.msk.f32.vlgmr.msra.gmra.mxu0 %vm288_vm1, %v633_v14 }
 0x231   :  { %v2157_v22 = vpop.eup %2156  ;;  %2063 = vmatpush3.msra.mxu0 %v286_v44  ;;  %2064 = vmatprep.mubr.msk.f32.mxu0 %vm2271_vm0, %v2269_v1 }
 0x232   :  { %v2159_v27 = vpop.eup %2158  ;;  %v634_v28 = vmul.f32 %v2157_v22, %v2366_v20  ;;  %2072 = vmatprep.subr.mxu0 %v2269_v1 }
 0x233   :  { %v635_v31 = vmul.f32 %v2159_v27, %v2368_v21  ;;  %v1102_v21 = vmul.f32 0.35355338, %v1098_v32 }
 0x234   :  { %2060 = vmatmul.mubr.msk.f32.vlgmr.msra.gmra.mxu1 %vm288_vm1, %v634_v28 }
 0x235   :  { %v2161_v33 = vpop.eup %2160  ;;  %2065 = vmatmul.mubr.msk.f32.vlgmr.msra.gmra.mxu0 %vm288_vm1, %v635_v31  ;;  %2068 = vmatpush3.msra.mxu1 %v287_v45 }
 0x236   :  { %2073 = vmatpush3.xpose.msk.msra.mxu0 %vm288_vm1, %v1169_v18  ;;  %2069 = vmatprep.mubr.msk.f32.mxu1 %vm2271_vm0, %v2269_v1  ;;  %v636_v20 = vmul.f32 %v2161_v33, %v2374_v24  ;;  %v1104_v24 = vmul.f32 0.35355338, %v1100_v38 }
 0x237   :  { %2074 = vmatprep.mubr.msk.f32.mxu0 %vm2271_vm0, %v2269_v1  ;;  %2077 = vmatprep.subr.mxu1 %v2269_v1 }
 0x238   :  { %2070 = vmatmul.mubr.msk.f32.vlgmr.msra.gmra.mxu1 %vm288_vm1, %v636_v20  ;;  %2082 = vmatprep.subr.mxu0 %v2269_v1 }
 0x239   :  { %2075 = vmatmul.mubr.msk.f32.vlgmr.msra.gmra.mxu0 %vm288_vm1, %v1101_v34  ;;  %2078 = vmatpush3.xpose.msk.msra.mxu1 %vm288_vm1, %v1170_v35 }
 0x23a   :  { %2083 = vmatpush3.xpose.msk.msra.mxu0 %vm288_vm1, %v1171_v37  ;;  %2079 = vmatprep.mubr.msk.f32.mxu1 %vm2271_vm0, %v2269_v1 }
 0x23b   :  { %2084 = vmatprep.mubr.msk.f32.mxu0 %vm2271_vm0, %v2269_v1  ;;  %2087 = vmatprep.subr.mxu1 %v2269_v1 }
 0x23c   :  { %2080 = vmatmul.mubr.msk.f32.vlgmr.msra.gmra.mxu1 %vm288_vm1, %v1102_v21  ;;  %2092 = vmatprep.subr.mxu0 %v2269_v1 }
 0x23d   :  { %2085 = vmatmul.mubr.msk.f32.vlgmr.msra.gmra.mxu0 %vm288_vm1, %v1103_v39  ;;  %2088 = vmatpush3.xpose.msk.msra.mxu1 %vm288_vm1, %v1172_v40 }
 0x23e   :  { %2089 = vmatprep.mubr.msk.f32.mxu1 %vm2271_vm0, %v2269_v1  ;;  %2094 = vmatprep.mubr.msk.f32.mxu0 %vm2271_vm0, %v2269_v1 }
 0x23f   :  { %2097 = vmatprep.subr.mxu1 %v2269_v1 }
 0x240   :  { %2090 = vmatmul.mubr.msk.f32.vlgmr.msra.gmra.mxu1 %vm288_vm1, %v1104_v24  ;;  %v2142_v24 = vld [vmem:[#allocation7 + $0x20] ss:$8 sps:$4 sm:$0xff]  }
 0x241   :  { %2099 = vmatprep.mubr.msk.f32.mxu1 %vm2271_vm0, %v2269_v1 }
 0x2f0   :  { %v706_v41 = vpop.f32.mrf.mxu0 }
 0x2f2   :  { %v2056_v42 = vpop.f32.mrf.mxu0 }
 0x2f3   :  { %v2144_v42 = vld [vmem:[#allocation7 + $0x30] ss:$8 sps:$4 sm:$0xff]  }
 0x2f4   :  { %v779_v43 = vpop.f32.mrf.mxu1 }
 0x2f5   :  { %v852_v44 = vpop.f32.mrf.mxu0 }
 0x2f6   :  { %v2061_v45 = vpop.f32.mrf.mxu1  ;;  %v929_v46 = vcombine.low %v706_v41, %v852_v44  ;;  %v930_v47 = vcombine.high %v706_v41, %v852_v44  ;;  %v2143_v41 = vld [vmem:[#allocation7 + $0x24] ss:$8 sps:$4 sm:$0xff]   ;;  %v1180_v44 = vrot.slane %v2142_v24, %v2318_v8 }
 0x2f7   :  { %v2066_v48 = vpop.f32.mrf.mxu0  ;;  %v1188_v45 = vrot.slane %v2143_v41, %v2318_v8 }
 0x2f8   :  { %v925_v49 = vpop.f32.mrf.mxu1  ;;  %v937_v55 = vrot.slane %v929_v46, %v2318_v8  ;;  %v944_v56 = vrot.slane %v930_v47, %v2318_v8  ;;  %v1196_v46 = vrot.slane %v2144_v42, %v2318_v8 }
 0x2f9   :  { %v945_v50 = vcombine.low %v779_v43, %v925_v49  ;;  %v946_v51 = vcombine.high %v779_v43, %v925_v49  ;;  %v1313_v52 = vpop.f32.mrf.mxu0  ;;  %v2145_v43 = vld [vmem:[#allocation7 + $0x34] ss:$8 sps:$4 sm:$0xff]   ;;  %v1205_v48 = vcombine.low %v1180_v44, %v1188_v45 }
 0x2fa   :  { %v2071_v53 = vpop.f32.mrf.mxu1  ;;  %v1545_v54 = vsel %vm288_vm1, %v1313_v52, -inf  ;;  %v1204_v47 = vrot.slane %v2145_v43, %v2318_v8 }
 0x2fb   :  { %v953_v57 = vrot.slane %v945_v50, %v2318_v8  ;;  %v960_v58 = vrot.slane %v946_v51, %v2318_v8  ;;  %1546 = vmax.xlane.f32.xlu0 %v1545_v54  ;;  %v2076_v59 = vpop.f32.mrf.mxu0  ;;  %v1213_v50 = vrot.slane %v1205_v48, %v2321_v15 }
 0x2fc   :  { %v1389_v60 = vpop.f32.mrf.mxu1  ;;  %v1221_v49 = vcombine.low %v1196_v46, %v1204_v47  ;;  %v1222_v53 = vcombine.high %v1196_v46, %v1204_v47 }
 0x2fd   :  { %v961_v61 = vcombine.low %v937_v55, %v953_v57  ;;  %v962_v62 = vcombine.high %v937_v55, %v953_v57  ;;  %v977_v63 = vcombine.low %v944_v56, %v960_v58  ;;  %v978_v0 = vcombine.high %v944_v56, %v960_v58  ;;  %v1465_v2 = vpop.f32.mrf.mxu0 }
 0x2fe   :  { %v1548_v3 = vsel %vm288_vm1, %v1389_v60, -inf  ;;  %v2081_v4 = vpop.f32.mrf.mxu1  ;;  %v1551_v5 = vsel %vm288_vm1, %v1465_v2, -inf  ;;  %v1229_v51 = vrot.slane %v1221_v49, %v2321_v15  ;;  %v1236_v57 = vrot.slane %v1222_v53, %v2321_v15 }
 0x2ff   :  { %v969_v6 = vrot.slane %v961_v61, %v2321_v15  ;;  %v976_v7 = vrot.slane %v962_v62, %v2321_v15  ;;  %v985_v9 = vrot.slane %v977_v63, %v2321_v15  ;;  %v992_v10 = vrot.slane %v978_v0, %v2321_v15  ;;  %1549 = vmax.xlane.f32.xlu1 %v1548_v3  ;;  %v2086_v11 = vpop.f32.mrf.mxu0 }
 0x300   :  { %1552 = vmax.xlane.f32.xlu0 %v1551_v5  ;;  %v1541_v12 = vpop.f32.mrf.mxu1  ;;  %v1237_v54 = vcombine.low %v1213_v50, %v1229_v51  ;;  %v1238_v55 = vcombine.high %v1213_v50, %v1229_v51 }
 0x301   :  { %v993_v13 = vcombine.high %v969_v6, %v2269_v1  ;;  %v994_v14 = vcombine.high %v976_v7, %v2269_v1  ;;  %v995_v16 = vcombine.high %v985_v9, %v2269_v1  ;;  %v996_v17 = vcombine.high %v992_v10, %v2269_v1  ;;  %998 = vst.msk [vmem:[#allocation8] sm:$0xf] %vm997_vm2, %v969_v6 }
 0x302   :  { %1000 = vst.msk [vmem:[#allocation8 + $0x8] sm:$0xf] %vm997_vm2, %v976_v7  ;;  %1002 = vst.msk [vmem:[#allocation8 + $0x10] sm:$0xf] %vm997_vm2, %v985_v9  ;;  %v1554_v19 = vsel %vm288_vm1, %v1541_v12, -inf  ;;  %v2091_v22 = vpop.f32.mrf.mxu1  ;;  %2093 = vmatpush3.msra.mxu0 %v1237_v54  ;;  %2098 = vmatpush3.msra.mxu1 %v1238_v55 }
 0x303   :  { %1004 = vst.msk [vmem:[#allocation8 + $0x18] sm:$0xf] %vm997_vm2, %v992_v10  ;;  %999 = vst.msk [vmem:[#allocation8 + $0x4] sm:$0xf] %vm997_vm2, %v993_v13  ;;  %1555 = vmax.xlane.f32.xlu1 %v1554_v19  ;;  %2102 = vmatprep.subr.mxu0 %v2269_v1 }
 0x304   :  { %1001 = vst.msk [vmem:[#allocation8 + $0xc] sm:$0xf] %vm997_vm2, %v994_v14  ;;  %1003 = vst.msk [vmem:[#allocation8 + $0x14] sm:$0xf] %vm997_vm2, %v995_v16  ;;  %2107 = vmatprep.subr.mxu1 %v2269_v1 }
 0x305   :  { %1005 = vst.msk [vmem:[#allocation8 + $0x1c] sm:$0xf] %vm997_vm2, %v996_v17 }
 0x384   :  { %v1547_v23 = vpop.xlane.xlu0 %1546 }
 0x385   :  { %v1557_v25 = vsub.f32 %v1313_v52, %v1547_v23  ;;  %v1206_v52 = vcombine.high %v1180_v44, %v1188_v45 }
 0x387   :  { %v1561_v26 = vmul.f32 1.442695, %v1557_v25  ;;  %v1220_v56 = vrot.slane %v1206_v52, %v2321_v15 }
 0x388   :  { %v1550_v27 = vpop.xlane.xlu1 %1549 }
 0x389   :  { %2162 = vpow2.f32 %v1561_v26  ;;  %v1558_v28 = vsub.f32 %v1389_v60, %v1550_v27  ;;  %v1553_v18 = vpop.xlane.xlu0 %1552  ;;  %v1239_v58 = vcombine.low %v1220_v56, %v1236_v57  ;;  %v1240_v59 = vcombine.high %v1220_v56, %v1236_v57 }
 0x38a   :  { %v1559_v29 = vsub.f32 %v1465_v2, %v1553_v18 }
 0x38b   :  { %v1563_v30 = vmul.f32 1.442695, %v1558_v28 }
 0x38c   :  { %v1565_v31 = vmul.f32 1.442695, %v1559_v29  ;;  %v1556_v32 = vpop.xlane.xlu1 %1555 }
 0x38d   :  { %2164 = vpow2.f32 %v1563_v30  ;;  %v1560_v33 = vsub.f32 %v1541_v12, %v1556_v32 }
 0x38e   :  { %2166 = vpow2.f32 %v1565_v31 }
 0x38f   :  { %v1567_v34 = vmul.f32 1.442695, %v1560_v33 }
 0x391   :  { %2168 = vpow2.f32 %v1567_v34 }
 0x396   :  { %v2163_v35 = vpop.eup %2162 }
 0x397   :  { %v1569_v36 = vsel %vm288_vm1, %v2163_v35, 0.0 }
 0x398   :  { %1570 = vadd.xlane.f32.xlu0 %v1569_v36 }
 0x39a   :  { %v2165_v20 = vpop.eup %2164 }
 0x39b   :  { %v2167_v37 = vpop.eup %2166  ;;  %v1572_v21 = vsel %vm288_vm1, %v2165_v20, 0.0 }
 0x39c   :  { %1573 = vadd.xlane.f32.xlu1 %v1572_v21  ;;  %v1575_v38 = vsel %vm288_vm1, %v2167_v37, 0.0 }
 0x39d   :  { %1576 = vadd.xlane.f32.xlu0 %v1575_v38 }
 0x39e   :  { %v2169_v39 = vpop.eup %2168 }
 0x39f   :  { %v1578_v40 = vsel %vm288_vm1, %v2169_v39, 0.0 }
 0x3a0   :  { %1579 = vadd.xlane.f32.xlu1 %v1578_v40 }
 0x421   :  { %v1571_v60 = vpop.xlane.xlu0 %1570 }
 0x422   :  { %2170 = vrcp.f32 %v1571_v60 }
 0x425   :  { %v1574_v61 = vpop.xlane.xlu1 %1573 }
 0x426   :  { %2172 = vrcp.f32 %v1574_v61  ;;  %v1577_v62 = vpop.xlane.xlu0 %1576 }
 0x427   :  { %2174 = vrcp.f32 %v1577_v62 }
 0x429   :  { %v1580_v63 = vpop.xlane.xlu1 %1579 }
 0x42a   :  { %2176 = vrcp.f32 %v1580_v63 }
 0x42f   :  { %v2171_v0 = vpop.eup %2170 }
 0x430   :  { %v1585_v2 = vmul.f32 %v2171_v0, %v2163_v35 }
 0x432   :  { %2095 = vmatmul.mubr.msk.f32.vlgmr.msra.gmra.mxu0 %vm288_vm1, %v1585_v2 }
 0x433   :  { %v2173_v3 = vpop.eup %2172  ;;  %2103 = vmatpush3.msra.mxu0 %v1239_v58  ;;  %2104 = vmatprep.mubr.msk.f32.mxu0 %vm2271_vm0, %v2269_v1 }
 0x434   :  { %v2175_v4 = vpop.eup %2174  ;;  %v1586_v5 = vmul.f32 %v2173_v3, %v2165_v20 }
 0x435   :  { %v1587_v6 = vmul.f32 %v2175_v4, %v2167_v37 }
 0x436   :  { %2100 = vmatmul.mubr.msk.f32.vlgmr.msra.gmra.mxu1 %vm288_vm1, %v1586_v5 }
 0x437   :  { %v2177_v7 = vpop.eup %2176  ;;  %2105 = vmatmul.mubr.msk.f32.vlgmr.msra.gmra.mxu0 %vm288_vm1, %v1587_v6  ;;  %2108 = vmatpush3.msra.mxu1 %v1240_v59 }
 0x438   :  { %2109 = vmatprep.mubr.msk.f32.mxu1 %vm2271_vm0, %v2269_v1  ;;  %v1588_v9 = vmul.f32 %v2177_v7, %v2169_v39 }
 0x43a   :  { %2110 = vmatmul.mubr.msk.f32.vlgmr.msra.gmra.mxu1 %vm288_vm1, %v1588_v9 }
 0x4f2   :  { %v1658_v10 = vpop.f32.mrf.mxu0 }
 0x4f4   :  { %v2096_v11 = vpop.f32.mrf.mxu0 }
 0x4f6   :  { %v1731_v12 = vpop.f32.mrf.mxu1 }
 0x4f7   :  { %v1804_v13 = vpop.f32.mrf.mxu0 }
 0x4f8   :  { %v2101_v14 = vpop.f32.mrf.mxu1  ;;  %v1881_v16 = vcombine.low %v1658_v10, %v1804_v13  ;;  %v1882_v17 = vcombine.high %v1658_v10, %v1804_v13 }
 0x4f9   :  { %v2106_v19 = vpop.f32.mrf.mxu0 }
 0x4fa   :  { %v1877_v22 = vpop.f32.mrf.mxu1  ;;  %v1889_v27 = vrot.slane %v1881_v16, %v2318_v8  ;;  %v1896_v28 = vrot.slane %v1882_v17, %v2318_v8 }
 0x4fb   :  { %v1897_v23 = vcombine.low %v1731_v12, %v1877_v22  ;;  %v1898_v25 = vcombine.high %v1731_v12, %v1877_v22 }
 0x4fc   :  { %v2111_v26 = vpop.f32.mrf.mxu1 }
 0x4fd   :  { %v1905_v18 = vrot.slane %v1897_v23, %v2318_v8  ;;  %v1912_v29 = vrot.slane %v1898_v25, %v2318_v8 }
 0x4ff   :  { %v1913_v30 = vcombine.low %v1889_v27, %v1905_v18  ;;  %v1914_v31 = vcombine.high %v1889_v27, %v1905_v18  ;;  %v1929_v32 = vcombine.low %v1896_v28, %v1912_v29  ;;  %v1930_v33 = vcombine.high %v1896_v28, %v1912_v29 }
 0x501   :  { %v1921_v34 = vrot.slane %v1913_v30, %v2321_v15  ;;  %v1928_v35 = vrot.slane %v1914_v31, %v2321_v15  ;;  %v1937_v36 = vrot.slane %v1929_v32, %v2321_v15  ;;  %v1944_v20 = vrot.slane %v1930_v33, %v2321_v15 }
 0x503   :  { %v1945_v37 = vcombine.high %v1921_v34, %v2269_v1  ;;  %v1946_v21 = vcombine.high %v1928_v35, %v2269_v1  ;;  %v1947_v8 = vcombine.high %v1937_v36, %v2269_v1  ;;  %v1948_v38 = vcombine.high %v1944_v20, %v2269_v1  ;;  %1950 = vst.msk [vmem:[#allocation8 + $0x20] sm:$0xf] %vm997_vm2, %v1921_v34 }
 0x504   :  { %1952 = vst.msk [vmem:[#allocation8 + $0x28] sm:$0xf] %vm997_vm2, %v1928_v35  ;;  %1954 = vst.msk [vmem:[#allocation8 + $0x30] sm:$0xf] %vm997_vm2, %v1937_v36 }
 0x505   :  { %1956 = vst.msk [vmem:[#allocation8 + $0x38] sm:$0xf] %vm997_vm2, %v1944_v20  ;;  %1951 = vst.msk [vmem:[#allocation8 + $0x24] sm:$0xf] %vm997_vm2, %v1945_v37 }
 0x506   :  { %1953 = vst.msk [vmem:[#allocation8 + $0x2c] sm:$0xf] %vm997_vm2, %v1946_v21  ;;  %1955 = vst.msk [vmem:[#allocation8 + $0x34] sm:$0xf] %vm997_vm2, %v1947_v8 }
 0x507   :  { %1957 = vst.msk [vmem:[#allocation8 + $0x3c] sm:$0xf] %vm997_vm2, %v1948_v38 }
 0x508   :  { %2249 = shalt.err (!%p2246_p5)
}
 0x509   :  { %1969 = dma.vmem_to_hbm [thread:$0]  %s1964_s2, 1024, %s2525_s3, [#allocation4], %s2266_s17, %s2266_s17, %s2267_s18  }
 0x50a   :  { %2262 = dma.done.wait [#allocation4], 1024  }
 0x50b   :  { %2263 = vsyncadd [#allocation4], 4294966272 }
 0x50c   :  { %1973 = vsyncpa [#allocation3], 1 }
 0x50d   :  { %1974 = vsyncpa [#allocation6], 1 }
 0x50e   :  { %1975 = vsyncpa [#allocation4], 1 }

</bundles_post_ra>
